<compile_context>
chip_gen: v7x
topology: tpu7x:2x2x1
jax: 0.10.0
libtpu: 0.0.40
codegen_flags: <defaults>
</compile_context>

<pallas_src>
import math

import jax
import jax.numpy as jnp
from jax.experimental import pallas as pl
from jax.experimental.pallas import tpu as pltpu

LANE = 128        # TPU lane width; classifier head padded to this for lane-dense stores.
NEG_SLOPE = 0.01  # F.leaky_relu default negative_slope
TB_MAX = 1024     # max batch-tile rows (well inside the ~512-row efficiency knee,
                  # and far under the v7x 32 MiB scoped-VMEM default)


def _leaky(x, slope=NEG_SLOPE):
    return jnp.where(x >= 0, x, slope * x)


def _round_up(n, m):
    return ((n + m - 1) // m) * m


# ----------------------------------------------------------------------------
# Fused kernel: f1 -> leaky_relu -> f2 -> leaky_relu -> fc   (single launch)
# bf16 MXU operands, f32 accumulation & elementwise math, f32 lane-dense output.
# ----------------------------------------------------------------------------
def polarity_classifier_kernel(x_ref, w1_ref, b1_ref, w2_ref, b2_ref,
                               wc_ref, bc_ref, out_ref):
    f32 = jnp.float32
    bf16 = jnp.bfloat16
    x = x_ref[...]                                                       # (TB, D) bf16
    h1 = _leaky(jnp.dot(x, w1_ref[...], preferred_element_type=f32) + b1_ref[...])
    h2 = _leaky(jnp.dot(h1.astype(bf16), w2_ref[...],
                        preferred_element_type=f32) + b2_ref[...])
    # Final projection: weight zero-padded to LANE output columns, so this store
    # is a full-width unmasked vst (lane-dense output slab).
    out_ref[...] = (jnp.dot(h2.astype(bf16), wc_ref[...],
                            preferred_element_type=f32) + bc_ref[...])


# ----------------------------------------------------------------------------
# Parameters: PyTorch nn.Linear default init U(-1/sqrt(fan_in), 1/sqrt(fan_in)).
# Weights stored transposed as (in_dim, out_dim), bf16 for the MXU; biases f32.
# Final layer zero-padded to LANE output columns (lane-dense store).
# ----------------------------------------------------------------------------
def init_params(key, input_dim, num_classes):
    def linear(k, fan_in, fan_out):
        kw, kb = jax.random.split(k)
        bound = 1.0 / math.sqrt(fan_in)
        w = jax.random.uniform(kw, (fan_in, fan_out), jnp.float32, -bound, bound)
        b = jax.random.uniform(kb, (1, fan_out), jnp.float32, -bound, bound)
        return w, b

    k1, k2, k3 = jax.random.split(key, 3)
    p = {}
    w1, p['b1'] = linear(k1, input_dim, input_dim)
    w2, p['b2'] = linear(k2, input_dim, input_dim)
    wc, bc = linear(k3, input_dim, num_classes)
    pad = LANE - num_classes
    p['w1'] = w1.astype(jnp.bfloat16)                                   # (D, D)
    p['w2'] = w2.astype(jnp.bfloat16)                                   # (D, D)
    p['wc'] = jnp.pad(wc, ((0, 0), (0, pad))).astype(jnp.bfloat16)      # (D, LANE)
    p['bc'] = jnp.pad(bc, ((0, 0), (0, pad)))                           # (1, LANE) f32
    return p


# ----------------------------------------------------------------------------
# Wrapper: batch-tiled pallas_call, resident weights, slice real columns out.
# ----------------------------------------------------------------------------
def polarity_classifier_forward(params, x, num_classes):
    B, D = x.shape
    x = x.astype(jnp.bfloat16)                   # halve the input DMA bytes

    # Tile rows: multiple of 16 (bf16 sublane packing); pad B to a tile multiple.
    tb = min(TB_MAX, _round_up(B, 16))
    Bp = _round_up(B, tb)
    if Bp != B:
        x = jnp.pad(x, ((0, Bp - B), (0, 0)))
    nb = Bp // tb

    flops = 2 * Bp * D * (2 * D + LANE)
    bytes_accessed = (Bp * D * 2 + Bp * LANE * 4            # x in, padded out slab
                      + 2 * D * D * 2 + D * LANE * 2        # bf16 weights
                      + 2 * D * 4 + LANE * 4)               # f32 biases

    out = pl.pallas_call(
        polarity_classifier_kernel,
        grid=(nb,),
        in_specs=[
            pl.BlockSpec((tb, D), lambda i: (i, 0)),         # x: pipelined per tile
            pl.BlockSpec((D, D), lambda i: (0, 0)),          # w1: VMEM-resident
            pl.BlockSpec((1, D), lambda i: (0, 0)),          # b1
            pl.BlockSpec((D, D), lambda i: (0, 0)),          # w2
            pl.BlockSpec((1, D), lambda i: (0, 0)),          # b2
            pl.BlockSpec((D, LANE), lambda i: (0, 0)),       # wc (padded)
            pl.BlockSpec((1, LANE), lambda i: (0, 0)),       # bc (padded)
        ],
        out_specs=pl.BlockSpec((tb, LANE), lambda i: (i, 0)),
        out_shape=jax.ShapeDtypeStruct((Bp, LANE), jnp.float32),
        compiler_params=pltpu.CompilerParams(
            dimension_semantics=("parallel",)),              # v7x dual-TC sharding
        cost_estimate=pl.CostEstimate(
            flops=flops, transcendentals=0, bytes_accessed=bytes_accessed),
    )(x, params['w1'], params['b1'], params['w2'], params['b2'],
      params['wc'], params['bc'])
    return out[:B, :num_classes]


# Pure-JAX reference (same mixed-precision recipe, for correctness check only).
def _reference(params, x, num_classes):
    f32, bf16 = jnp.float32, jnp.bfloat16
    xb = x.astype(bf16)
    h1 = _leaky(jnp.dot(xb, params['w1'], preferred_element_type=f32) + params['b1'])
    h2 = _leaky(jnp.dot(h1.astype(bf16), params['w2'],
                        preferred_element_type=f32) + params['b2'])
    out = jnp.dot(h2.astype(bf16), params['wc'],
                  preferred_element_type=f32) + params['bc']
    return out[:, :num_classes]


if __name__ == "__main__":
    input_dim = 16       # matches encoder_output_dim feeding the classifier
    num_classes = 3
    batch = 2

    key = jax.random.PRNGKey(0)
    k_params, k_x, k_x2 = jax.random.split(key, 3)
    params = init_params(k_params, input_dim, num_classes)

    # Tiny-batch case (matches the toy module usage).
    x = jax.random.normal(k_x, (batch, input_dim), jnp.float32)
    out = jax.block_until_ready(polarity_classifier_forward(params, x, num_classes))
    assert out.shape == (batch, num_classes)
    assert bool(jnp.all(jnp.isfinite(out)))
    ref = _reference(params, x, num_classes)
    assert bool(jnp.allclose(out, ref, atol=1e-2, rtol=1e-2)), "mismatch vs reference (B=2)"

    # Non-tile-multiple batch to exercise the grid / padding path.
    x2 = jax.random.normal(k_x2, (40, input_dim), jnp.float32)
    out2 = jax.block_until_ready(polarity_classifier_forward(params, x2, num_classes))
    assert out2.shape == (40, num_classes)
    ref2 = _reference(params, x2, num_classes)
    assert bool(jnp.allclose(out2, ref2, atol=1e-2, rtol=1e-2)), "mismatch vs reference (B=40)"

    print("KERNEL_OK")
</pallas_src>

<mosaic_0001>
module attributes {stable_mosaic.version = 11 : i64} {
  func.func @polarity_classifier_kernel(%arg0: i32, %arg1: memref<16x16xbf16, #tpu.memory_space<vmem>>, %arg2: memref<16x16xbf16, #tpu.memory_space<vmem>>, %arg3: memref<1x16xf32, #tpu.memory_space<vmem>>, %arg4: memref<16x16xbf16, #tpu.memory_space<vmem>>, %arg5: memref<1x16xf32, #tpu.memory_space<vmem>>, %arg6: memref<16x128xbf16, #tpu.memory_space<vmem>>, %arg7: memref<1x128xf32, #tpu.memory_space<vmem>>, %arg8: memref<16x128xf32, #tpu.memory_space<vmem>>) attributes {dimension_semantics = [#tpu.dimension_semantics<parallel>], iteration_bounds = array<i64: 1>, scalar_prefetch = 0 : i64, scratch_operands = 0 : i64, tpu.core_type = #tpu.core_type<tc>, window_params = [{transform_indices = @transform_0, window_bounds = array<i64: 16, 16>}, {pipeline_mode = #tpu.pipeline_mode<synchronous>, transform_indices = @transform_1, window_bounds = array<i64: 16, 16>}, {pipeline_mode = #tpu.pipeline_mode<synchronous>, transform_indices = @transform_2, window_bounds = array<i64: 1, 16>}, {pipeline_mode = #tpu.pipeline_mode<synchronous>, transform_indices = @transform_3, window_bounds = array<i64: 16, 16>}, {pipeline_mode = #tpu.pipeline_mode<synchronous>, transform_indices = @transform_4, window_bounds = array<i64: 1, 16>}, {pipeline_mode = #tpu.pipeline_mode<synchronous>, transform_indices = @transform_5, window_bounds = array<i64: 16, 128>}, {pipeline_mode = #tpu.pipeline_mode<synchronous>, transform_indices = @transform_6, window_bounds = array<i64: 1, 128>}, {transform_indices = @transform_7, window_bounds = array<i64: 16, 128>}]} {
    %c0 = arith.constant 0 : index
    %c0_0 = arith.constant 0 : index
    %0 = vector.load %arg1[%c0, %c0_0] : memref<16x16xbf16, #tpu.memory_space<vmem>>, vector<16x16xbf16>
    %c0_1 = arith.constant 0 : index
    %c0_2 = arith.constant 0 : index
    %1 = vector.load %arg2[%c0_1, %c0_2] : memref<16x16xbf16, #tpu.memory_space<vmem>>, vector<16x16xbf16>
    %cst = arith.constant dense<0.000000e+00> : vector<16x16xf32>
    %2 = tpu.matmul %0, %1, %cst {dimension_numbers = #tpu.dot_dimension_numbers<[1], [0], [0], [1], [0, 0, 1, 1], [], []>} : vector<16x16xbf16>, vector<16x16xbf16>, vector<16x16xf32> -> vector<16x16xf32>
    %c0_3 = arith.constant 0 : index
    %c0_4 = arith.constant 0 : index
    %3 = vector.load %arg3[%c0_3, %c0_4] : memref<1x16xf32, #tpu.memory_space<vmem>>, vector<1x16xf32>
    %4 = vector.broadcast %3 : vector<1x16xf32> to vector<16x16xf32>
    %5 = arith.addf %2, %4 : vector<16x16xf32>
    %cst_5 = arith.constant 0.000000e+00 : f32
    %6 = vector.broadcast %cst_5 : f32 to vector<16x16xf32>
    %7 = arith.cmpf oge, %5, %6 : vector<16x16xf32>
    %cst_6 = arith.constant 0.00999999977 : f32
    %8 = vector.broadcast %cst_6 : f32 to vector<16x16xf32>
    %9 = arith.mulf %8, %5 : vector<16x16xf32>
    %10 = arith.select %7, %5, %9 : vector<16x16xi1>, vector<16x16xf32>
    %11 = arith.truncf %10 : vector<16x16xf32> to vector<16x16xbf16>
    %c0_7 = arith.constant 0 : index
    %c0_8 = arith.constant 0 : index
    %12 = vector.load %arg4[%c0_7, %c0_8] : memref<16x16xbf16, #tpu.memory_space<vmem>>, vector<16x16xbf16>
    %cst_9 = arith.constant dense<0.000000e+00> : vector<16x16xf32>
    %13 = tpu.matmul %11, %12, %cst_9 {dimension_numbers = #tpu.dot_dimension_numbers<[1], [0], [0], [1], [0, 0, 1, 1], [], []>} : vector<16x16xbf16>, vector<16x16xbf16>, vector<16x16xf32> -> vector<16x16xf32>
    %c0_10 = arith.constant 0 : index
    %c0_11 = arith.constant 0 : index
    %14 = vector.load %arg5[%c0_10, %c0_11] : memref<1x16xf32, #tpu.memory_space<vmem>>, vector<1x16xf32>
    %15 = vector.broadcast %14 : vector<1x16xf32> to vector<16x16xf32>
    %16 = arith.addf %13, %15 : vector<16x16xf32>
    %cst_12 = arith.constant 0.000000e+00 : f32
    %17 = vector.broadcast %cst_12 : f32 to vector<16x16xf32>
    %18 = arith.cmpf oge, %16, %17 : vector<16x16xf32>
    %cst_13 = arith.constant 0.00999999977 : f32
    %19 = vector.broadcast %cst_13 : f32 to vector<16x16xf32>
    %20 = arith.mulf %19, %16 : vector<16x16xf32>
    %21 = arith.select %18, %16, %20 : vector<16x16xi1>, vector<16x16xf32>
    %22 = arith.truncf %21 : vector<16x16xf32> to vector<16x16xbf16>
    %c0_14 = arith.constant 0 : index
    %c0_15 = arith.constant 0 : index
    %23 = vector.load %arg6[%c0_14, %c0_15] : memref<16x128xbf16, #tpu.memory_space<vmem>>, vector<16x128xbf16>
    %cst_16 = arith.constant dense<0.000000e+00> : vector<16x128xf32>
    %24 = tpu.matmul %22, %23, %cst_16 {dimension_numbers = #tpu.dot_dimension_numbers<[1], [0], [0], [1], [0, 0, 1, 1], [], []>} : vector<16x16xbf16>, vector<16x128xbf16>, vector<16x128xf32> -> vector<16x128xf32>
    %c0_17 = arith.constant 0 : index
    %c0_18 = arith.constant 0 : index
    %25 = vector.load %arg7[%c0_17, %c0_18] : memref<1x128xf32, #tpu.memory_space<vmem>>, vector<1x128xf32>
    %26 = vector.broadcast %25 : vector<1x128xf32> to vector<16x128xf32>
    %27 = arith.addf %24, %26 : vector<16x128xf32>
    %c0_19 = arith.constant 0 : index
    %c0_20 = arith.constant 0 : index
    %28 = vector.load %arg8[%c0_19, %c0_20] : memref<16x128xf32, #tpu.memory_space<vmem>>, vector<16x128xf32>
    tpu.vector_store %arg8[%c0_19, %c0_20], %27 {strides = array<i32>} : memref<16x128xf32, #tpu.memory_space<vmem>>, vector<16x128xf32>,
    return
  }
  func.func @transform_0(%arg0: i32) -> (i32, i32) {
    %c0_i32 = arith.constant 0 : i32
    %c0_i32_0 = arith.constant 0 : i32
    return %arg0, %c0_i32 : i32, i32
  }
  func.func @transform_1(%arg0: i32) -> (i32, i32) {
    %c0_i32 = arith.constant 0 : i32
    %c0_i32_0 = arith.constant 0 : i32
    %c0_i32_1 = arith.constant 0 : i32
    return %c0_i32, %c0_i32_0 : i32, i32
  }
  func.func @transform_2(%arg0: i32) -> (i32, i32) {
    %c0_i32 = arith.constant 0 : i32
    %c0_i32_0 = arith.constant 0 : i32
    %c0_i32_1 = arith.constant 0 : i32
    return %c0_i32, %c0_i32_0 : i32, i32
  }
  func.func @transform_3(%arg0: i32) -> (i32, i32) {
    %c0_i32 = arith.constant 0 : i32
    %c0_i32_0 = arith.constant 0 : i32
    %c0_i32_1 = arith.constant 0 : i32
    return %c0_i32, %c0_i32_0 : i32, i32
  }
  func.func @transform_4(%arg0: i32) -> (i32, i32) {
    %c0_i32 = arith.constant 0 : i32
    %c0_i32_0 = arith.constant 0 : i32
    %c0_i32_1 = arith.constant 0 : i32
    return %c0_i32, %c0_i32_0 : i32, i32
  }
  func.func @transform_5(%arg0: i32) -> (i32, i32) {
    %c0_i32 = arith.constant 0 : i32
    %c0_i32_0 = arith.constant 0 : i32
    %c0_i32_1 = arith.constant 0 : i32
    return %c0_i32, %c0_i32_0 : i32, i32
  }
  func.func @transform_6(%arg0: i32) -> (i32, i32) {
    %c0_i32 = arith.constant 0 : i32
    %c0_i32_0 = arith.constant 0 : i32
    %c0_i32_1 = arith.constant 0 : i32
    return %c0_i32, %c0_i32_0 : i32, i32
  }
  func.func @transform_7(%arg0: i32) -> (i32, i32) {
    %c0_i32 = arith.constant 0 : i32
    %c0_i32_0 = arith.constant 0 : i32
    return %arg0, %c0_i32 : i32, i32
  }
}

</mosaic_0001>

<bundles_post_ra>
// kernel: tpu_custom_call.1
= control target key start
LH: loop header
LB: loop body
LE: loop exit
PB: predicated region body
PF: predicated region fallthrough
CT: control target
= control target key end

     0   :  { %12 = vsyncpa [#allocation3], 0  ;;  %s497_s0 = inlined_call_operand.hbm [shape: bf16[16,16], index: 0, kind: input, shape index: {}]   ;;  %s498_s1 = inlined_call_operand.hbm [shape: bf16[16,16], index: 1, kind: input, shape index: {}]   ;;  %s499_s2 = inlined_call_operand.vmem [shape: f32[1,16], index: 2, kind: input, shape index: {}]   ;;  %s500_s3 = inlined_call_operand.vmem [shape: bf16[16,16], index: 3, kind: input, shape index: {}]   ;;  %s501_s4 = inlined_call_operand.vmem [shape: f32[1,16], index: 4, kind: input, shape index: {}]   ;;  %s502_s5 = inlined_call_operand.vmem [shape: bf16[16,128], index: 5, kind: input, shape index: {}]   ;;  %s503_s6 = inlined_call_operand.vmem [shape: f32[1,128], index: 6, kind: input, shape index: {}]   ;;  %s504_s7 = inlined_call_operand.hbm [shape: f32[16,128], index: 7, kind: output, shape index: {}]  }
   0x1   :  { %13 = vsyncpa [#allocation6], 0 }
   0x2   :  { %14 = vsyncpa [#allocation4], 0  ;;  %s394_s24 = smov [#allocation2]   ;;  %s322_s28 = scalar_lea.hbm %s497_s0, 128 }
   0x3   :  { %s20_s25 = sshll.u32 %s394_s24, 4  ;;  %p323_p0 = scmp.ne.s32.totalorder %s497_s0, %s322_s28  ;;  %s21_s25 = int_to_ptr.vmem [resolvable:$true] %s20_s25 }
   0x4   :  { %p326_p1 = scmp.lt.u32.totalorder %s322_s28, %s497_s0 }
   0x6   :  { %p328_p2 = pnand %p326_p1, %p323_p0 }
   0x8   :  { %331 = shalt.err (!%p328_p2)
}
   0x9   :  { %s332_s10 = scalar_lea.vmem %s21_s25, 128  ;;  %p337_p4 = scmp.lt.s32.totalorder %s21_s25, %s21_s25 }
   0xa   :  { %p333_p3 = scmp.ne.s32.totalorder %s21_s25, %s332_s10  ;;  %p338_p5 = scmp.lt.s32.totalorder %s332_s10, %s332_s10 }
   0xc   :  { %p339_p6 = por %p338_p5, %p337_p4 }
   0xe   :  { %p340_p7 = pnand %p339_p6, %p333_p3 }
  0x10   :  { %343 = shalt.err (!%p340_p7)
}
  0x11   :  { %s395_s11 = smov 64   ;;  %s396_s12 = smov 4  }
  0x12   :  { %26 = dma.hbm_to_vmem [thread:$0]  %s497_s0, 128, %s21_s25, [#allocation3], %s395_s11, %s395_s11, %s396_s12  }
  0x13   :  { %s397_s15 = smov [#allocation5]   ;;  %s344_s19 = scalar_lea.hbm %s498_s1, 128 }
  0x14   :  { %s32_s16 = sshll.u32 %s397_s15, 4  ;;  %p345_p8 = scmp.ne.s32.totalorder %s498_s1, %s344_s19  ;;  %s33_s16 = int_to_ptr.vmem [resolvable:$true] %s32_s16 }
  0x15   :  { %p348_p9 = scmp.lt.u32.totalorder %s344_s19, %s498_s1 }
  0x17   :  { %p350_p10 = pnand %p348_p9, %p345_p8 }
  0x19   :  { %353 = shalt.err (!%p350_p10)
}
  0x1a   :  { %s354_s24 = scalar_lea.vmem %s33_s16, 128  ;;  %p359_p12 = scmp.lt.s32.totalorder %s33_s16, %s33_s16 }
  0x1b   :  { %p355_p11 = scmp.ne.s32.totalorder %s33_s16, %s354_s24  ;;  %p360_p13 = scmp.lt.s32.totalorder %s354_s24, %s354_s24 }
  0x1d   :  { %p361_p0 = por %p360_p13, %p359_p12 }
  0x1f   :  { %p362_p1 = pnand %p361_p0, %p355_p11 }
  0x21   :  { %365 = shalt.err (!%p362_p1)
}
  0x22   :  { %38 = dma.hbm_to_vmem [thread:$0]  %s498_s1, 128, %s33_s16, [#allocation6], %s395_s11, %s395_s11, %s396_s12  }
  0x23   :  { %388 = dma.done.wait [#allocation3], 128  }
  0x24   :  { %389 = vsyncadd [#allocation3], 4294967168 }
  0x25   :  { %390 = dma.done.wait [#allocation6], 128  }
  0x26   :  { %391 = vsyncadd [#allocation6], 4294967168  ;;  %v398_v0 = vmov 0.0   ;;  %vm399_vm0 = vmmov 0   ;;  %v318_v1 = vld [vmem:[#allocation5] sm:$0xff]   ;;  %v319_v2 = vld [vmem:[#allocation2] sm:$0xff]  }
  0x27   :  { %291 = vmatprep.subr.bf16.mxu0 %v398_v0  ;;  %293 = vmatprep.mubr.msk.bf16.mxu0 %vm399_vm0, %v398_v0  ;;  %vm78_vm1 = vcmask 130048   ;;  %v320_v3 = vld [vmem:[%s500_s3] sm:$0xff]  }
  0x28   :  { %297 = vmatprep.subr.bf16.mxu1 %v398_v0  ;;  %299 = vmatprep.mubr.msk.bf16.mxu1 %vm399_vm0, %v398_v0  ;;  %v275_v4 = vld [vmem:[%s499_s2] ss:$0 sm:$0xff] }
  0x29   :  { %292 = vmatpush3.bf16.msra.mxu0 %v318_v1  ;;  %298 = vmatpush3.bf16.msra.mxu1 %v320_v3  ;;  %v321_v16 = vld [vmem:[%s502_s5] sm:$0xff]  }
  0x2a   :  { %303 = vmatprep.subr.bf16.mxu0 %v398_v0  ;;  %v279_v17 = vld [vmem:[%s501_s4] ss:$0 sm:$0xff]  ;;  %s400_s4 = smov [#allocation7]  }
  0x2b   :  { %v282_v29 = vld [vmem:[%s503_s6] ss:$0 sm:$0xff]  ;;  %s262_s9 = sshll.u32 %s400_s4, 4  ;;  %s263_s9 = int_to_ptr.vmem [resolvable:$true] %s262_s9 }
  0x2c   :  { %294 = vmatmul.mubr.msk.bf16.vlgmr.msra.gmra.mrb[0].mxu0 %vm78_vm1, %v319_v2  ;;  %s366_s10 = scalar_lea.vmem %s263_s9, 256  ;;  %p371_p3 = scmp.lt.s32.totalorder %s263_s9, %s263_s9 }
  0x2d   :  { %305 = vmatprep.mubr.msk.bf16.mxu0 %vm399_vm0, %v398_v0  ;;  %304 = vmatpush3.bf16.msra.mxu0 %v321_v16  ;;  %p367_p2 = scmp.ne.s32.totalorder %s263_s9, %s366_s10  ;;  %p372_p4 = scmp.lt.s32.totalorder %s366_s10, %s366_s10 }
  0x2f   :  { %p373_p5 = por %p372_p4, %p371_p3 }
  0x31   :  { %p374_p6 = pnand %p373_p5, %p367_p2 }
  0xff   :  { %v116_v5 = vpop.f32.mrb[0].mxu0 }
 0x100   :  { %v117_v6 = vadd.f32 %v275_v4, %v116_v5  ;;  %v295_v7 = vpop.f32.mrb[1].mxu0 }
 0x101   :  { %v119_v8 = vpop.f32.mrb[2].mxu0 }
 0x102   :  { %v125_v9 = vmul.f32 0.01, %v117_v6  ;;  %v120_v10 = vadd.f32 %v275_v4, %v119_v8  ;;  %v296_v11 = vpop.f32.mrb[3].mxu0  ;;  %vm123_vm2 = vcmp.ge.f32.partialorder %v117_v6, 0.0 }
 0x104   :  { %vm124_vm3 = vcmp.ge.f32.partialorder %v120_v10, 0.0  ;;  %v126_v12 = vmul.f32 0.01, %v120_v10  ;;  %v127_v13 = vsel %vm123_vm2, %v117_v6, %v125_v9 }
 0x106   :  { %v128_v14 = vsel %vm124_vm3, %v120_v10, %v126_v12 }
 0x107   :  { %v129_v15 = vpack.c.bf16 %v128_v14, %v127_v13 }
 0x109   :  { %300 = vmatmul.mubr.msk.bf16.vlgmr.msra.gmra.mrb[0].mxu1 %vm78_vm1, %v129_v15 }
 0x1dc   :  { %v182_v18 = vpop.f32.mrb[0].mxu1 }
 0x1dd   :  { %v183_v19 = vadd.f32 %v279_v17, %v182_v18  ;;  %v301_v20 = vpop.f32.mrb[1].mxu1 }
 0x1de   :  { %v185_v21 = vpop.f32.mrb[2].mxu1 }
 0x1df   :  { %v191_v22 = vmul.f32 0.01, %v183_v19  ;;  %v186_v23 = vadd.f32 %v279_v17, %v185_v21  ;;  %v302_v24 = vpop.f32.mrb[3].mxu1  ;;  %vm189_vm4 = vcmp.ge.f32.partialorder %v183_v19, 0.0 }
 0x1e1   :  { %vm190_vm5 = vcmp.ge.f32.partialorder %v186_v23, 0.0  ;;  %v192_v25 = vmul.f32 0.01, %v186_v23  ;;  %v193_v26 = vsel %vm189_vm4, %v183_v19, %v191_v22 }
 0x1e3   :  { %v194_v27 = vsel %vm190_vm5, %v186_v23, %v192_v25 }
 0x1e4   :  { %v195_v28 = vpack.c.bf16 %v194_v27, %v193_v26 }
 0x1e6   :  { %306 = vmatmul.mubr.msk.bf16.vlgmr.msra.gmra.mrb[4].mxu0 %vm78_vm1, %v195_v28 }
 0x2b9   :  { %v248_v30 = vpop.f32.mrb[4].mxu0 }
 0x2ba   :  { %v249_v31 = vadd.f32 %v282_v29, %v248_v30  ;;  %v307_v32 = vpop.f32.mrb[5].mxu0 }
 0x2bb   :  { %v251_v33 = vpop.f32.mrb[6].mxu0 }
 0x2bc   :  { %255 = vst [vmem:[#allocation7] sm:$0xff] %v249_v31  ;;  %v252_v34 = vadd.f32 %v282_v29, %v251_v33  ;;  %v308_v35 = vpop.f32.mrb[7].mxu0 }
 0x2be   :  { %256 = vst [vmem:[#allocation7 + $0x8] sm:$0xff] %v252_v34 }
 0x2bf   :  { %377 = shalt.err (!%p374_p6)
}
 0x2c0   :  { %s378_s12 = scalar_lea.hbm %s504_s7, 256 }
 0x2c1   :  { %p379_p7 = scmp.ne.s32.totalorder %s504_s7, %s378_s12  ;;  %p382_p8 = scmp.lt.u32.totalorder %s378_s12, %s504_s7 }
 0x2c3   :  { %p384_p9 = pnand %p382_p8, %p379_p7 }
 0x2c5   :  { %387 = shalt.err (!%p384_p9)
}
 0x2c6   :  { %s401_s17 = smov 128   ;;  %s402_s18 = smov 8  }
 0x2c7   :  { %268 = dma.vmem_to_hbm [thread:$0]  %s263_s9, 256, %s504_s7, [#allocation4], %s401_s17, %s401_s17, %s402_s18  }
 0x2c8   :  { %392 = dma.done.wait [#allocation4], 256  }
 0x2c9   :  { %393 = vsyncadd [#allocation4], 4294967040 }
 0x2ca   :  { %272 = vsyncpa [#allocation3], 1 }
 0x2cb   :  { %273 = vsyncpa [#allocation6], 1 }
 0x2cc   :  { %274 = vsyncpa [#allocation4], 1 }

</bundles_post_ra>
